<compile_context>
chip_gen: v5e
topology: v5e:2x2
jax: 0.10.0
libtpu: 0.0.40
codegen_flags: <defaults>
</compile_context>

<pallas_src>
import math

import jax
import jax.numpy as jnp
from jax.experimental import pallas as pl
from jax.experimental.pallas import tpu as pltpu


# ----------------------------- Pallas kernel ------------------------------- #
def sepnet_kernel(x_ref, wa_ref, wb_ref, out_ref):
    """One batch block of out[b] = ref_A @ x[b]^T @ ref_B.

    x_ref  : [BB*Mp, Kp]   compute dtype (bf16) -- BB batch elements, rows flattened
    wa_ref : [Ap, Kp]      compute dtype, pre-masked ref_A (grid-invariant)
    wb_ref : [Mp, Hp]      compute dtype, pre-masked ref_B (grid-invariant)
    out_ref: [BB, Ap, Hp]  output dtype
    """
    bb = out_ref.shape[0]
    mp = x_ref.shape[0] // bb

    # (1) temp = X_flat @ ref_A^T  -> [BB*Mp, Ap]
    #     Tall LHS feeds the MXU; trans_b contraction expressed with
    #     dimension_numbers (no .T / XLU transpose); f32 accumulation.
    temp = jax.lax.dot_general(
        x_ref[...], wa_ref[...],
        dimension_numbers=(((1,), (1,)), ((), ())),
        preferred_element_type=jnp.float32)
    temp = temp.astype(wb_ref.dtype)          # bf16 operand for the 2nd MXU pass

    wb = wb_ref[...]
    # (2) out[b] = temp[b]^T @ ref_B  -> [Ap, Hp]
    #     trans_a contraction via dimension_numbers; BB is small & static,
    #     so this unrolls (LLO gets full visibility).
    for b in range(bb):
        t_b = temp[b * mp:(b + 1) * mp, :]                     # [Mp, Ap]
        out_b = jax.lax.dot_general(
            t_b, wb,
            dimension_numbers=(((0,), (0,)), ((), ())),
            preferred_element_type=jnp.float32)                # [Ap, Hp]
        out_ref[b] = out_b.astype(out_ref.dtype)


# --------------------------------- wrapper ---------------------------------- #
def _round_up(v, m):
    return ((v + m - 1) // m) * m


def sepnet_linear_200_forward(x, A_ref, B_ref, popup_scores_A, popup_scores_B, k,
                              *, compute_dtype=jnp.bfloat16):
    """Pallas implementation of SepnetLinear_200.forward.

    x: [batch, M, K], A_ref: [A_W, A_H=K], B_ref: [B_W=M, B_H].
    Returns (out, A_ref, B_ref) exactly like the PyTorch module,
    out: [batch, A_W, B_H].
    """
    batch, M, K = x.shape
    A_W, A_H = A_ref.shape
    B_W, B_H = B_ref.shape
    assert K == A_H and M == B_W, "shape mismatch with torch.bmm contract"
    out_dtype = x.dtype

    # -- GetSubnet + mask-apply: parameter prep, done ONCE in plain JAX --------
    #    (hoisted out of the batch loop; kernel only sees pre-masked weights).
    adj_A = _get_subnet(jnp.abs(popup_scores_A), k)
    adj_B = _get_subnet(jnp.abs(popup_scores_B), k)
    ref_A = (A_ref * adj_A).astype(compute_dtype)          # [A_W, K]
    ref_B = (B_ref * adj_B).astype(compute_dtype)          # [M,  B_H]

    # -- pad to TPU-friendly tiles: lanes (last dim) multiple of 128, ----------
    #    sublanes multiple of 16 (bf16 packing). Zero padding is exact here.
    itemsize = jnp.dtype(compute_dtype).itemsize
    sub = 16 if itemsize == 2 else 8
    Kp = _round_up(K, 128)
    Hp = _round_up(B_H, 128)
    Mp = _round_up(M, sub)
    Ap = _round_up(A_W, sub)

    wa = jnp.pad(ref_A, ((0, Ap - A_W), (0, Kp - K)))       # [Ap, Kp]
    wb = jnp.pad(ref_B, ((0, Mp - M), (0, Hp - B_H)))       # [Mp, Hp]

    # -- batch blocking: aim for >=256 LHS rows per MXU call, cap x block VMEM --
    BB = max(1, min(batch, max(1, 256 // Mp)))
    max_bb = max(1, (8 * 1024 * 1024) // (Mp * Kp * itemsize))
    BB = min(BB, max_bb)
    Bp = _round_up(batch, BB)
    grid = Bp // BB

    xp = jnp.pad(x.astype(compute_dtype),
                 ((0, Bp - batch), (0, Mp - M), (0, Kp - K)))
    x_flat = xp.reshape(Bp * Mp, Kp)        # wrapper-side reshape (layout plumbing)

    # -- VMEM budget / compiler params -----------------------------------------
    out_itemsize = jnp.dtype(out_dtype).itemsize
    x_block_bytes = BB * Mp * Kp * itemsize
    out_block_bytes = BB * Ap * Hp * out_itemsize
    temp_bytes = BB * Mp * Ap * 4
    w_bytes = (Ap * Kp + Mp * Hp) * itemsize
    vmem_est = 2 * (x_block_bytes + out_block_bytes) + 2 * w_bytes + 2 * temp_bytes
    vmem_limit = None
    if vmem_est > 24 * 1024 * 1024:
        # TODO(synk): for weights too large for ~64 MiB (v7x VMEM per TC), tile
        # A_W/B_H as parallel grid axes and K as a trailing 'arbitrary'
        # reduction axis with an f32 VMEM accumulator instead of residency.
        vmem_limit = int(min(max(vmem_est * 5 // 4, 32 * 1024 * 1024),
                             64 * 1024 * 1024))

    flops = 2 * batch * (M * K * A_W + A_W * M * B_H)
    bytes_accessed = int(x_flat.size * itemsize + wa.size * itemsize
                         + wb.size * itemsize + Bp * Ap * Hp * out_itemsize)

    out_padded = pl.pallas_call(
        sepnet_kernel,
        out_shape=jax.ShapeDtypeStruct((Bp, Ap, Hp), out_dtype),
        grid=(grid,),
        in_specs=[
            pl.BlockSpec((BB * Mp, Kp), lambda b: (b, 0)),   # x rows of block b
            pl.BlockSpec((Ap, Kp), lambda b: (0, 0)),        # masked A (resident)
            pl.BlockSpec((Mp, Hp), lambda b: (0, 0)),        # masked B (resident)
        ],
        out_specs=pl.BlockSpec((BB, Ap, Hp), lambda b: (b, 0, 0)),
        compiler_params=pltpu.CompilerParams(
            dimension_semantics=("parallel",),               # shards over TCs on v7x
            vmem_limit_bytes=vmem_limit,
        ),
        cost_estimate=pl.CostEstimate(
            flops=flops, transcendentals=0, bytes_accessed=bytes_accessed),
    )(x_flat, wa, wb)

    out = out_padded[:batch, :A_W, :B_H]
    return out, A_ref, B_ref


# --------------------------- GetSubnet (glue) ------------------------------- #
def _get_subnet(scores, k):
    """Faithful reproduction of GetSubnet.forward:
       sort flattened scores ascending; bottom j = int((1-k)*numel) -> 0,
       rest -> 1 (python slicing semantics for negative j).
       One argsort + one scatter (instead of two argsorts)."""
    n = scores.size
    j = int((1 - k) * n)
    split = j if j >= 0 else n + j
    split = max(0, min(split, n))
    order = jnp.argsort(scores.reshape(-1))           # ascending, stable
    mask = jnp.zeros((n,), scores.dtype).at[order[split:]].set(1)
    return mask.reshape(scores.shape)


# ----------------------- deterministic parameter init ----------------------- #
def _kaiming_uniform(key, shape, dtype=jnp.float32):
    # PyTorch kaiming_uniform_(a=sqrt(5)) on a 2D tensor [W, H]:
    # fan_in = H, gain = sqrt(2/(1+5)) => bound = 1/sqrt(fan_in)
    fan_in = shape[1]
    bound = 1.0 / math.sqrt(fan_in)
    return jax.random.uniform(key, shape, dtype, minval=-bound, maxval=bound)


# --------------------------------- main -------------------------------------- #
if __name__ == "__main__":
    # Shapes consistent with the module's bmm contract:
    #   x: [batch, M, K], A_ref: [A_W, A_H=K], B_ref: [B_W=M, B_H],
    #   out: [batch, A_W, B_H]
    batch, M, K = 2, 8, 16
    A_W, A_H = 16, K
    B_W, B_H = M, 32

    key = jax.random.PRNGKey(0)
    kx, ka, kb, ksa, ksb = jax.random.split(key, 5)

    x = jax.random.normal(kx, (batch, M, K), dtype=jnp.float32)
    A_ref = _kaiming_uniform(ka, (A_W, A_H))
    B_ref = _kaiming_uniform(kb, (B_W, B_H))
    popup_scores_A = _kaiming_uniform(ksa, (A_W, A_H))
    popup_scores_B = _kaiming_uniform(ksb, (B_W, B_H))

    # set_prune_rate(0.005) -> self.k = 0.5 (module multiplies by 100)
    prune_rate = 0.005
    k_keep = prune_rate * 100

    out, a_out, b_out = sepnet_linear_200_forward(
        x, A_ref, B_ref, popup_scores_A, popup_scores_B, k_keep
    )
    out = jax.block_until_ready(out)

    # --- references ----------------------------------------------------------
    adj_A = _get_subnet(jnp.abs(popup_scores_A), k_keep)
    adj_B = _get_subnet(jnp.abs(popup_scores_B), k_keep)
    refA_f32 = A_ref * adj_A
    refB_f32 = B_ref * adj_B

    # exact f32 reference (torch semantics)
    temp_f32 = jnp.einsum("bmk,ak->bma", x, refA_f32)
    ref_f32 = jnp.einsum("bma,mh->bah", temp_f32, refB_f32)

    # bf16-operand / f32-accumulate reference mirroring the kernel's numerics
    xb = x.astype(jnp.bfloat16)
    wab = refA_f32.astype(jnp.bfloat16)
    wbb = refB_f32.astype(jnp.bfloat16)
    temp_b = jnp.einsum("bmk,ak->bma", xb, wab,
                        preferred_element_type=jnp.float32).astype(jnp.bfloat16)
    ref_b = jnp.einsum("bma,mh->bah", temp_b, wbb,
                       preferred_element_type=jnp.float32)

    assert out.shape == (batch, A_W, B_H)
    assert jnp.allclose(out, ref_b, atol=1e-2, rtol=1e-2)
    assert jnp.allclose(out, ref_f32, atol=1e-1, rtol=1e-1)
    assert jnp.array_equal(a_out, A_ref) and jnp.array_equal(b_out, B_ref)

    print("KERNEL_OK")
</pallas_src>

<mosaic_0001>
module attributes {stable_mosaic.version = 11 : i64} {
  func.func @sepnet_kernel(%arg0: i32, %arg1: memref<32x128xbf16, #tpu.memory_space<vmem>>, %arg2: memref<16x128xbf16, #tpu.memory_space<vmem>>, %arg3: memref<16x128xbf16, #tpu.memory_space<vmem>>, %arg4: memref<2x16x128xf32, #tpu.memory_space<vmem>>) attributes {dimension_semantics = [#tpu.dimension_semantics<parallel>], iteration_bounds = array<i64: 1>, scalar_prefetch = 0 : i64, scratch_operands = 0 : i64, tpu.core_type = #tpu.core_type<tc>, window_params = [{transform_indices = @transform_0, window_bounds = array<i64: 32, 128>}, {pipeline_mode = #tpu.pipeline_mode<synchronous>, transform_indices = @transform_1, window_bounds = array<i64: 16, 128>}, {pipeline_mode = #tpu.pipeline_mode<synchronous>, transform_indices = @transform_2, window_bounds = array<i64: 16, 128>}, {transform_indices = @transform_3, window_bounds = array<i64: 2, 16, 128>}]} {
    %c0 = arith.constant 0 : index
    %c0_0 = arith.constant 0 : index
    %0 = vector.load %arg1[%c0, %c0_0] : memref<32x128xbf16, #tpu.memory_space<vmem>>, vector<32x128xbf16>
    %c0_1 = arith.constant 0 : index
    %c0_2 = arith.constant 0 : index
    %1 = vector.load %arg2[%c0_1, %c0_2] : memref<16x128xbf16, #tpu.memory_space<vmem>>, vector<16x128xbf16>
    %cst = arith.constant dense<0.000000e+00> : vector<32x16xf32>
    %2 = tpu.matmul %0, %1, %cst {dimension_numbers = #tpu.dot_dimension_numbers<[1], [1], [0], [0], [0, 0, 1, 0], [], []>} : vector<32x128xbf16>, vector<16x128xbf16>, vector<32x16xf32> -> vector<32x16xf32>
    %3 = arith.truncf %2 : vector<32x16xf32> to vector<32x16xbf16>
    %c0_3 = arith.constant 0 : index
    %c0_4 = arith.constant 0 : index
    %4 = vector.load %arg3[%c0_3, %c0_4] : memref<16x128xbf16, #tpu.memory_space<vmem>>, vector<16x128xbf16>
    %5 = vector.extract_strided_slice %3 {offsets = [0, 0], sizes = [16, 16], strides = [1, 1]} : vector<32x16xbf16> to vector<16x16xbf16>
    %cst_5 = arith.constant dense<0.000000e+00> : vector<16x128xf32>
    %6 = tpu.matmul %5, %4, %cst_5 {dimension_numbers = #tpu.dot_dimension_numbers<[0], [0], [1], [1], [0, 1, 1, 1], [], []>} : vector<16x16xbf16>, vector<16x128xbf16>, vector<16x128xf32> -> vector<16x128xf32>
    %c0_6 = arith.constant 0 : index
    %c0_7 = arith.constant 0 : index
    %c0_8 = arith.constant 0 : index
    %7 = vector.load %arg4[%c0_6, %c0_7, %c0_8] : memref<2x16x128xf32, #tpu.memory_space<vmem>>, vector<1x16x128xf32>
    %8 = vector.shape_cast %7 : vector<1x16x128xf32> to vector<16x128xf32>
    %9 = vector.shape_cast %6 : vector<16x128xf32> to vector<1x16x128xf32>
    tpu.vector_store %arg4[%c0_6, %c0_7, %c0_8], %9 {strides = array<i32>} : memref<2x16x128xf32, #tpu.memory_space<vmem>>, vector<1x16x128xf32>,
    %10 = vector.extract_strided_slice %3 {offsets = [16, 0], sizes = [16, 16], strides = [1, 1]} : vector<32x16xbf16> to vector<16x16xbf16>
    %cst_9 = arith.constant dense<0.000000e+00> : vector<16x128xf32>
    %11 = tpu.matmul %10, %4, %cst_9 {dimension_numbers = #tpu.dot_dimension_numbers<[0], [0], [1], [1], [0, 1, 1, 1], [], []>} : vector<16x16xbf16>, vector<16x128xbf16>, vector<16x128xf32> -> vector<16x128xf32>
    %c1 = arith.constant 1 : index
    %c0_10 = arith.constant 0 : index
    %c0_11 = arith.constant 0 : index
    %12 = vector.load %arg4[%c1, %c0_10, %c0_11] : memref<2x16x128xf32, #tpu.memory_space<vmem>>, vector<1x16x128xf32>
    %13 = vector.shape_cast %12 : vector<1x16x128xf32> to vector<16x128xf32>
    %14 = vector.shape_cast %11 : vector<16x128xf32> to vector<1x16x128xf32>
    tpu.vector_store %arg4[%c1, %c0_10, %c0_11], %14 {strides = array<i32>} : memref<2x16x128xf32, #tpu.memory_space<vmem>>, vector<1x16x128xf32>,
    return
  }
  func.func @transform_0(%arg0: i32) -> (i32, i32) {
    %c0_i32 = arith.constant 0 : i32
    %c0_i32_0 = arith.constant 0 : i32
    return %arg0, %c0_i32 : i32, i32
  }
  func.func @transform_1(%arg0: i32) -> (i32, i32) {
    %c0_i32 = arith.constant 0 : i32
    %c0_i32_0 = arith.constant 0 : i32
    %c0_i32_1 = arith.constant 0 : i32
    return %c0_i32, %c0_i32_0 : i32, i32
  }
  func.func @transform_2(%arg0: i32) -> (i32, i32) {
    %c0_i32 = arith.constant 0 : i32
    %c0_i32_0 = arith.constant 0 : i32
    %c0_i32_1 = arith.constant 0 : i32
    return %c0_i32, %c0_i32_0 : i32, i32
  }
  func.func @transform_3(%arg0: i32) -> (i32, i32, i32) {
    %c0_i32 = arith.constant 0 : i32
    %c0_i32_0 = arith.constant 0 : i32
    %c0_i32_1 = arith.constant 0 : i32
    return %arg0, %c0_i32, %c0_i32_0 : i32, i32, i32
  }
}

</mosaic_0001>

<bundles_post_ra>
// kernel: tpu_custom_call.1
= control target key start
LH: loop header
LB: loop body
LE: loop exit
PB: predicated region body
PF: predicated region fallthrough
CT: control target
= control target key end

     0   :  { %8 = vsyncpa [#allocation3], 0  ;;  %s396_s0 = inlined_call_operand.hbm [shape: bf16[32,128], index: 0, kind: input, shape index: {}]   ;;  %s397_s1 = inlined_call_operand.hbm [shape: bf16[16,128], index: 1, kind: input, shape index: {}]   ;;  %s398_s2 = inlined_call_operand.hbm [shape: bf16[16,128], index: 2, kind: input, shape index: {}]   ;;  %s399_s3 = inlined_call_operand.hbm [shape: f32[2,16,128], index: 3, kind: output, shape index: {}]  }
   0x1   :  { %9 = vsyncpa [#allocation6], 0 }
   0x2   :  { %10 = vsyncpa [#allocation4], 0  ;;  %s28_s14 = sshll.u32 %s397_s1, 4  ;;  %s356_s15 = smov [#allocation5]   ;;  %s29_s14 = int_to_ptr.hbm [resolvable:$true] %s28_s14 }
   0x3   :  { %s30_s16 = sshll.u32 %s356_s15, 4  ;;  %s15_s19 = sshll.u32 %s396_s0, 4  ;;  %s31_s16 = int_to_ptr.vmem [resolvable:$true] %s30_s16  ;;  %s16_s19 = int_to_ptr.hbm [resolvable:$true] %s15_s19 }
   0x4   :  { %s357_s20 = smov 64   ;;  %s358_s21 = smov 4  }
   0x5   :  { %36 = dma.hbm_to_vmem [thread:$0]  %s29_s14, 128, %s31_s16, [#allocation6], %s357_s20, %s357_s20, %s358_s21  }
   0x6   :  { %s359_s22 = smov [#allocation2]   ;;  %s41_s26 = sshll.u32 %s398_s2, 4  ;;  %s42_s26 = int_to_ptr.hbm [resolvable:$true] %s41_s26 }
   0x7   :  { %s17_s23 = sshll.u32 %s359_s22, 4  ;;  %s360_s1 = smov [#allocation7]   ;;  %s18_s23 = int_to_ptr.vmem [resolvable:$true] %s17_s23 }
   0x8   :  { %23 = dma.hbm_to_vmem [thread:$0]  %s16_s19, 256, %s18_s23, [#allocation3], %s357_s20, %s357_s20, %s358_s21  }
   0x9   :  { %s43_s27 = sshll.u32 %s360_s1, 4  ;;  %s44_s27 = int_to_ptr.vmem [resolvable:$true] %s43_s27 }
   0xa   :  { %49 = dma.hbm_to_vmem [thread:$0]  %s42_s26, 128, %s44_s27, [#allocation6], %s357_s20, %s357_s20, %s358_s21  }
   0xb   :  { %350 = dma.done.wait [#allocation3], 256  }
   0xc   :  { %351 = vsyncadd [#allocation3], 4294967040 }
   0xd   :  { %352 = dma.done.wait [#allocation6], 256  }
   0xe   :  { %353 = vsyncadd [#allocation6], 4294967040  ;;  %v242_v0 = vld [vmem:[#allocation5] sm:$0xff]  ;;  %v241_v1 = vld [vmem:[#allocation2 + $0x8] sm:$0xff]  ;;  %vm140_vm0 = vcmask 130048   ;;  %s361_s0 = smov [#allocation8]  }
   0xf   :  { %244 = vmatpush.bf16.xpose.msra.mxu3 %v242_v0  ;;  %94 = vmatpush.bf16.xpose.msra.mxu0 %v242_v0  ;;  %v240_v2 = vld [vmem:[#allocation2] sm:$0xff]  ;;  %v243_v3 = vld [vmem:[#allocation7] sm:$0xff]  ;;  %s206_s2 = sshll.u32 %s361_s0, 4  ;;  %s208_s30 = sshll.u32 %s399_s3, 4  ;;  %s207_s2 = int_to_ptr.vmem [resolvable:$true] %s206_s2  ;;  %s209_s30 = int_to_ptr.hbm [resolvable:$true] %s208_s30 }
  0x10   :  { %192 = vmatpush.bf16.msra.mxu2 %v243_v3  ;;  %151 = vmatpush.bf16.msra.mxu1 %v243_v3  ;;  %s362_s4 = smov 128   ;;  %s363_s5 = smov 8  }
  0x16   :  { %100 = vmatmul.bf16.vlgmr.msra.gmra.mxu3 %v241_v1  ;;  %95 = vmatmul.bf16.vlgmr.msra.gmra.mxu0 %v240_v2 }
  0x93   :  { %v96_v6 = vpop.f32.mrf.mxu0 }
  0x94   :  { %v106_v13 = vpack.c.bf16 %v96_v6, %v96_v6 }
  0x96   :  { %v114_v15 = vunpack.c.l.b16 %v106_v13 }
  0x99   :  { %v101_v4 = vpop.f32.mrf.mxu3 }
  0x9a   :  { %v108_v5 = vpack.c.bf16 %v101_v4, %v101_v4 }
  0x9b   :  { %v98_v12 = vpop.f32.mrf.mxu0 }
  0x9c   :  { %v162_v9 = vunpack.c.l.b16 %v108_v5  ;;  %v107_v14 = vpack.c.bf16 %v98_v12, %v98_v12 }
  0x9e   :  { %v115_v16 = vunpack.c.l.b16 %v107_v14 }
  0xa0   :  { %v116_v17 = vpack.c.b16 %v115_v16, %v114_v15 }
  0xa1   :  { %v103_v7 = vpop.f32.mrf.mxu3 }
  0xa2   :  { %v109_v8 = vpack.c.bf16 %v103_v7, %v103_v7 }
  0xa4   :  { %v163_v10 = vunpack.c.l.b16 %v109_v8 }
  0xa6   :  { %v164_v11 = vpack.c.b16 %v163_v10, %v162_v9 }
  0xa8   :  { %166 = vxpose.xlu0.c.b16.start.end [1/1] (short) (narrow) %v164_v11, 16 }
  0xb8   :  { %118 = vxpose.xlu0.c.b16.start.end [1/1] (short) (narrow) %v116_v17, 16 }
 0x154   :  { %v174_v18 = vpop.trf.xlu0 }
 0x155   :  { %239 = vmatmul.msk.bf16.vlgmr.msra.gmra.mxu2 %vm140_vm0, %v174_v18 }
 0x164   :  { %v126_v19 = vpop.trf.xlu0 }
 0x165   :  { %238 = vmatmul.msk.bf16.vlgmr.msra.gmra.mxu1 %vm140_vm0, %v126_v19 }
 0x1d8   :  { %v194_v20 = vpop.f32.mrf.mxu2 }
 0x1d9   :  { %200 = vst [vmem:[#allocation8 + $0x10] sm:$0xff] %v194_v20 }
 0x1e0   :  { %v196_v21 = vpop.f32.mrf.mxu2 }
 0x1e1   :  { %201 = vst [vmem:[#allocation8 + $0x18] sm:$0xff] %v196_v21 }
 0x1e2   :  { %v153_v22 = vpop.f32.mrf.mxu1 }
 0x1e3   :  { %158 = vst [vmem:[#allocation8] sm:$0xff] %v153_v22 }
 0x1ea   :  { %v155_v23 = vpop.f32.mrf.mxu1 }
 0x1eb   :  { %159 = vst [vmem:[#allocation8 + $0x8] sm:$0xff] %v155_v23 }
 0x1ec   :  { %214 = dma.vmem_to_hbm [thread:$0]  %s207_s2, 512, %s209_s30, [#allocation4], %s362_s4, %s362_s4, %s363_s5  }
 0x1ed   :  { %354 = dma.done.wait [#allocation4], 512  }
 0x1ee   :  { %355 = vsyncadd [#allocation4], 4294966784 }
 0x1ef   :  { %219 = vsyncpa [#allocation3], 1 }
 0x1f0   :  { %220 = vsyncpa [#allocation6], 1 }
 0x1f1   :  { %221 = vsyncpa [#allocation4], 1 }

</bundles_post_ra>
